<compile_context>
chip_gen: v5e
topology: v5e:2x2
jax: 0.10.0
libtpu: 0.0.40
codegen_flags: <defaults>
</compile_context>

<pallas_src>
import math

import jax
import jax.numpy as jnp
from jax.experimental import pallas as pl
from jax.experimental.pallas import tpu as pltpu


def final_layer_kernel(x_ref, w_ref, b_ref, o_ref):
    """out = rsqrt(sum(x^2, -1)) * (x @ W_fold) + bias_fold   (per token row)."""
    x = x_ref[0]                                              # (TN, dim)

    # RMSNorm denominator; accumulate in f32.  rsqrt(max(ssq,1e-24)) matches
    # 1 / max(||x||, 1e-12) from F.normalize.  (EUP rsqrt, not sqrt+divide.)
    xf = x.astype(jnp.float32)
    ssq = jnp.sum(xf * xf, axis=-1, keepdims=True)            # (TN, 1)
    inv = jax.lax.rsqrt(jnp.maximum(ssq, 1e-24))

    # MXU matmul in the weight dtype with f32 accumulation.  The adaLN
    # modulation is already folded into w_ref / b_ref in the wrapper, and the
    # per-row normalizer is applied to the (TN, out_pad) result instead of the
    # (TN, dim) input.
    x_mm = x if x.dtype == w_ref.dtype else x.astype(w_ref.dtype)
    acc = jnp.dot(x_mm, w_ref[0], preferred_element_type=jnp.float32)  # (TN, out_pad)

    # TODO(synk): dropout is identity at inference (p=0 / eval mode); not modeled.
    o_ref[0] = (acc * inv + b_ref[0]).astype(o_ref.dtype)


def _token_tile(N, target=1024):
    """Fixed token tile + cdiv grid.  target is a multiple of 32 so packed
    sub-32-bit dtypes stay sublane-dense; small N uses the full extent."""
    return N if N <= target else target


def _vmem_limit_bytes(tn, dim, out_pad, x_dtype, w_dtype):
    """Footprint-derived VMEM limit, capped so it is safe on v7x (64 MiB)."""
    xb = jnp.dtype(x_dtype).itemsize
    wb = jnp.dtype(w_dtype).itemsize
    fp = 2 * tn * dim * xb            # x tile, double-buffered
    fp += 2 * tn * out_pad * xb       # output tile, double-buffered
    fp += 2 * dim * out_pad * wb      # folded weight block
    fp += 2 * out_pad * 4             # folded bias block (f32)
    fp += tn * out_pad * 4            # f32 accumulator / temporaries
    limit = int(fp * 1.5) + (4 << 20)
    return max(16 << 20, min(limit, 40 << 20))


def final_layer_forward(x, c, params, *, token_tile=None, return_padded=False):
    """x: (B, N, dim), c: (B, dim) -> (B, N, patch*patch*out_dim)."""
    B, N, dim = x.shape
    out_dtype = x.dtype

    # ---- Hoisted adaLN branch (plain JAX, tiny (B, dim) matvecs) -----------
    g = params["g"].reshape(()).astype(jnp.float32)
    c32 = c.astype(jnp.float32)
    silu_c = c32 * jax.nn.sigmoid(c32)
    shift = silu_c @ params["w_shift"].astype(jnp.float32) + params["b_shift"].astype(jnp.float32)
    scale = silu_c @ params["w_scale"].astype(jnp.float32) + params["b_scale"].astype(jnp.float32)
    mod_scale = (dim ** 0.5) * g * (1.0 + scale)              # (B, dim)

    # ---- Lane-dense output: pad final linear to a multiple of 128 columns --
    w_lin = params["w_lin"]                                   # (dim, out_feat)
    b_lin = params["b_lin"]                                   # (1, out_feat)
    out_feat = w_lin.shape[1]
    out_pad = ((out_feat + 127) // 128) * 128
    if out_pad != out_feat:
        w_lin = jnp.pad(w_lin, ((0, 0), (0, out_pad - out_feat)))
        b_lin = jnp.pad(b_lin, ((0, 0), (0, out_pad - out_feat)))

    # ---- Fold the modulation into per-batch weight / bias (f32, then cast) -
    w32 = w_lin.astype(jnp.float32)
    w_fold = (mod_scale[:, :, None] * w32[None, :, :]).astype(w_lin.dtype)   # (B, dim, out_pad)
    bias_fold = (shift @ w32 + b_lin.astype(jnp.float32))[:, None, :]        # (B, 1, out_pad) f32

    # ---- Token tiling (fixed tile, cdiv grid; ragged tail is masked) -------
    tn = token_tile if token_tile is not None else _token_tile(N)
    grid = (B, pl.cdiv(N, tn))
    vmem_limit = _vmem_limit_bytes(tn, dim, out_pad, x.dtype, w_fold.dtype)

    out_padded = pl.pallas_call(
        final_layer_kernel,
        out_shape=jax.ShapeDtypeStruct((B, N, out_pad), out_dtype),
        grid_spec=pltpu.PrefetchScalarGridSpec(
            num_scalar_prefetch=0,
            grid=grid,
            in_specs=[
                pl.BlockSpec((1, tn, dim), lambda b, j: (b, j, 0)),       # x tile
                pl.BlockSpec((1, dim, out_pad), lambda b, j: (b, 0, 0)),  # folded W
                pl.BlockSpec((1, 1, out_pad), lambda b, j: (b, 0, 0)),    # folded bias
            ],
            out_specs=pl.BlockSpec((1, tn, out_pad), lambda b, j: (b, j, 0)),
        ),
        compiler_params=pltpu.CompilerParams(
            # Both axes parallel: megacore / 2-TC sharding (v7x) gets work as
            # long as B >= 2 or there are multiple token tiles.
            dimension_semantics=("parallel", "parallel"),
            vmem_limit_bytes=vmem_limit,
        ),
    )(x, w_fold, bias_fold)

    if return_padded or out_pad == out_feat:
        return out_padded
    return out_padded[..., :out_feat]


def make_params(key, dim, patch_size, out_dim):
    """Deterministic synthetic parameters matching FinalLayer.__init__ shapes."""
    out_feat = patch_size * patch_size * out_dim
    k = jax.random.split(key, 4)
    # adaLN linear: Linear(dim, 2*dim) -> weight (2*dim, dim), bias (2*dim,)
    w_mod = jax.random.normal(k[0], (2 * dim, dim), jnp.float32) / math.sqrt(dim)
    b_mod = jax.random.normal(k[1], (2 * dim,), jnp.float32) * 0.02
    # final linear: Linear(dim, out_feat) -> weight (out_feat, dim), bias (out_feat,)
    w_final = jax.random.normal(k[2], (out_feat, dim), jnp.float32) / math.sqrt(dim)
    b_final = jax.random.normal(k[3], (out_feat,), jnp.float32) * 0.02
    # RMSNorm gain g: nn.Parameter(torch.ones(1)) -> scalar gain
    g = jnp.ones((1, 1), jnp.float32)

    # chunk(2, dim=-1): first half of output features -> shift, second -> scale
    w_shift = w_mod[:dim, :].T          # (dim, dim)
    w_scale = w_mod[dim:, :].T          # (dim, dim)
    b_shift = b_mod[:dim].reshape(1, dim)
    b_scale = b_mod[dim:].reshape(1, dim)
    w_lin = w_final.T                   # (dim, out_feat)
    b_lin = b_final.reshape(1, out_feat)

    return {
        "g": g,
        "w_shift": w_shift, "b_shift": b_shift,
        "w_scale": w_scale, "b_scale": b_scale,
        "w_lin": w_lin, "b_lin": b_lin,
    }


def reference_forward(x, c, params):
    """Pure-JAX reference mirroring the PyTorch forward."""
    dim = x.shape[-1]
    silu_c = c * jax.nn.sigmoid(c)
    shift = silu_c @ params["w_shift"] + params["b_shift"]
    scale = silu_c @ params["w_scale"] + params["b_scale"]
    l2 = jnp.sqrt(jnp.sum(x * x, axis=-1, keepdims=True))
    xn = x / jnp.maximum(l2, 1e-12) * (dim ** 0.5) * params["g"][0, 0]
    y = xn * (1.0 + scale[:, None, :]) + shift[:, None, :]
    return y @ params["w_lin"] + params["b_lin"]


if __name__ == "__main__":
    B, N, dim = 2, 8, 32
    patch_size, out_dim = 2, 4
    # dropout = 0.0 -> Identity at inference; not modeled in the kernel.

    key = jax.random.PRNGKey(0)
    kx, kc, kp = jax.random.split(key, 3)
    x = jax.random.normal(kx, (B, N, dim), jnp.float32)
    c = jax.random.normal(kc, (B, dim), jnp.float32)
    params = make_params(kp, dim, patch_size, out_dim)

    out = final_layer_forward(x, c, params)
    out = jax.block_until_ready(out)

    ref = reference_forward(x, c, params)
    assert out.shape == (B, N, patch_size * patch_size * out_dim)
    assert jnp.allclose(out, ref, atol=1e-4, rtol=1e-4)
    print("KERNEL_OK")
</pallas_src>

<mosaic_0001>
module attributes {stable_mosaic.version = 11 : i64} {
  func.func @final_layer_kernel(%arg0: i32, %arg1: i32, %arg2: memref<1x8x32xf32, #tpu.memory_space<vmem>>, %arg3: memref<1x32x128xf32, #tpu.memory_space<vmem>>, %arg4: memref<1x1x128xf32, #tpu.memory_space<vmem>>, %arg5: memref<1x8x128xf32, #tpu.memory_space<vmem>>) attributes {dimension_semantics = [#tpu.dimension_semantics<parallel>, #tpu.dimension_semantics<parallel>], iteration_bounds = array<i64: 2, 1>, scalar_prefetch = 0 : i64, scratch_operands = 0 : i64, tpu.core_type = #tpu.core_type<tc>, window_params = [{transform_indices = @transform_0, window_bounds = array<i64: 1, 8, 32>}, {transform_indices = @transform_1, window_bounds = array<i64: 1, 32, 128>}, {transform_indices = @transform_2, window_bounds = array<i64: 1, 1, 128>}, {transform_indices = @transform_3, window_bounds = array<i64: 1, 8, 128>}]} {
    %c0 = arith.constant 0 : index
    %c0_0 = arith.constant 0 : index
    %c0_1 = arith.constant 0 : index
    %0 = vector.load %arg2[%c0, %c0_0, %c0_1] : memref<1x8x32xf32, #tpu.memory_space<vmem>>, vector<1x8x32xf32>
    %1 = vector.shape_cast %0 : vector<1x8x32xf32> to vector<8x32xf32>
    %2 = arith.mulf %1, %1 : vector<8x32xf32>
    %cst = arith.constant dense<0.000000e+00> : vector<8xf32>
    %3 = vector.multi_reduction <add>, %2, %cst [1] : vector<8x32xf32> to vector<8xf32>
    %4 = vector.shape_cast %3 : vector<8xf32> to vector<8x1xf32>
    %cst_2 = arith.constant 1.000000e-24 : f32
    %5 = vector.broadcast %cst_2 : f32 to vector<8x1xf32>
    %6 = arith.maximumf %4, %5 : vector<8x1xf32>
    %7 = math.rsqrt %6 : vector<8x1xf32>
    %c0_3 = arith.constant 0 : index
    %c0_4 = arith.constant 0 : index
    %c0_5 = arith.constant 0 : index
    %8 = vector.load %arg3[%c0_3, %c0_4, %c0_5] : memref<1x32x128xf32, #tpu.memory_space<vmem>>, vector<1x32x128xf32>
    %9 = vector.shape_cast %8 : vector<1x32x128xf32> to vector<32x128xf32>
    %cst_6 = arith.constant dense<0.000000e+00> : vector<8x128xf32>
    %10 = tpu.matmul %1, %9, %cst_6 {dimension_numbers = #tpu.dot_dimension_numbers<[1], [0], [0], [1], [0, 0, 1, 1], [], []>} : vector<8x32xf32>, vector<32x128xf32>, vector<8x128xf32> -> vector<8x128xf32>
    %11 = vector.broadcast %7 : vector<8x1xf32> to vector<8x128xf32>
    %12 = arith.mulf %10, %11 : vector<8x128xf32>
    %c0_7 = arith.constant 0 : index
    %c0_8 = arith.constant 0 : index
    %c0_9 = arith.constant 0 : index
    %13 = vector.load %arg4[%c0_7, %c0_8, %c0_9] : memref<1x1x128xf32, #tpu.memory_space<vmem>>, vector<1x1x128xf32>
    %14 = vector.shape_cast %13 : vector<1x1x128xf32> to vector<1x128xf32>
    %15 = vector.broadcast %14 : vector<1x128xf32> to vector<8x128xf32>
    %16 = arith.addf %12, %15 : vector<8x128xf32>
    %c0_10 = arith.constant 0 : index
    %c0_11 = arith.constant 0 : index
    %c0_12 = arith.constant 0 : index
    %17 = vector.load %arg5[%c0_10, %c0_11, %c0_12] : memref<1x8x128xf32, #tpu.memory_space<vmem>>, vector<1x8x128xf32>
    %18 = vector.shape_cast %17 : vector<1x8x128xf32> to vector<8x128xf32>
    %19 = vector.shape_cast %16 : vector<8x128xf32> to vector<1x8x128xf32>
    tpu.vector_store %arg5[%c0_10, %c0_11, %c0_12], %19 {strides = array<i32>} : memref<1x8x128xf32, #tpu.memory_space<vmem>>, vector<1x8x128xf32>,
    return
  }
  func.func @transform_0(%arg0: i32, %arg1: i32) -> (i32, i32, i32) {
    %c0_i32 = arith.constant 0 : i32
    %c0_i32_0 = arith.constant 0 : i32
    return %arg0, %arg1, %c0_i32 : i32, i32, i32
  }
  func.func @transform_1(%arg0: i32, %arg1: i32) -> (i32, i32, i32) {
    %c0_i32 = arith.constant 0 : i32
    %c0_i32_0 = arith.constant 0 : i32
    %c0_i32_1 = arith.constant 0 : i32
    return %arg0, %c0_i32, %c0_i32_0 : i32, i32, i32
  }
  func.func @transform_2(%arg0: i32, %arg1: i32) -> (i32, i32, i32) {
    %c0_i32 = arith.constant 0 : i32
    %c0_i32_0 = arith.constant 0 : i32
    %c0_i32_1 = arith.constant 0 : i32
    return %arg0, %c0_i32, %c0_i32_0 : i32, i32, i32
  }
  func.func @transform_3(%arg0: i32, %arg1: i32) -> (i32, i32, i32) {
    %c0_i32 = arith.constant 0 : i32
    %c0_i32_0 = arith.constant 0 : i32
    return %arg0, %arg1, %c0_i32 : i32, i32, i32
  }
}

</mosaic_0001>

<bundles_post_ra>
// kernel: tpu_custom_call.1
= control target key start
LH: loop header
LB: loop body
LE: loop exit
PB: predicated region body
PF: predicated region fallthrough
CT: control target
= control target key end

     0   :  { %s928_s0 = inlined_call_operand.hbm [shape: f32[2,8,32], index: 0, kind: input, shape index: {}]   ;;  %s929_s1 = inlined_call_operand.hbm [shape: f32[2,32,128], index: 1, kind: input, shape index: {}]   ;;  %s930_s2 = inlined_call_operand.hbm [shape: f32[2,1,128], index: 2, kind: input, shape index: {}]   ;;  %s931_s3 = inlined_call_operand.hbm [shape: f32[2,8,128], index: 3, kind: output, shape index: {}]  }
   0x1   :  { %934 = sst [smem:[#allocation15_spill]] %s929_s1 }
   0x2   :  { %8 = vsyncpa [#allocation3], 0 }
   0x3   :  { %10 = vsyncpa [#allocation3 + $0x1], 0 }
   0x4   :  { %11 = vsyncpa [#allocation6], 0 }
   0x5   :  { %13 = vsyncpa [#allocation6 + $0x1], 0 }
   0x6   :  { %14 = vsyncpa [#allocation4], 0 }
   0x7   :  { %16 = vsyncpa [#allocation4 + $0x1], 0  ;;  %s762_s12 = smov 0   ;;  %s764_s13 = smov 0  }
   0x8   :  { %s766_s14 = smov 0   ;;  %s768_s15 = smov 0  }
   0x9   :  { %s770_s16 = smov 0   ;;  %s772_s17 = smov 0  }
   0xa LB: > { %935 = sst [smem:[#allocation12_spill]] %s726_s14  ;;  %s793_s18 = sadd.s32 4294967295, %s738_s17   ;;  %s738_s17 = sphi %s772_s17, %s22_s17   ;;  %s734_s16 = sphi %s770_s16, %s952_s16   ;;  %s730_s15 = sphi %s768_s15, %s951_s15   ;;  %s726_s14 = sphi %s766_s14, %s950_s14   ;;  %s722_s13 = sphi %s764_s13, %s949_s13   ;;  %s718_s12 = sphi %s762_s12, %s948_s12  }
   0xb   : > { %s467_s19 = sadd.s32 4294967294, %s738_s17   ;;  %s34_s20 = sadd.s32 1, %s734_s16 }
   0xc   : > { %s43_s21 = sadd.s32 1, %s726_s14  ;;  %p36_p0 = scmp.ge.s32.totalorder %s34_s20, 2 }
   0xd   : > { %p50_p1 = scmp.ne.s32.totalorder %s726_s14, %s722_s13  ;;  %p51_p2 = scmp.eq.s32.totalorder %s738_s17, 0 }
   0xe   : > { %p56_p3 = scmp.ne.s32.totalorder %s722_s13, %s718_s12  ;;  %s954_s20 = smov (%p36_p0, %s34_s20), 0 }
   0xf   : > { %936 = sst [smem:[#allocation13_spill]] %s954_s20  ;;  %p805_p4 = por %p51_p2, %p50_p1 }
  0x10   : > { %p57_p5 = scmp.eq.s32.totalorder %s793_s18, 0  ;;  %s38_s23 = ssub.s32 %s734_s16, %s954_s20 }
  0x11   : > { %p134_p6 = scmp.eq.s32.totalorder %s793_s18, 1  ;;  %p41_p7 = scmp.eq.s32.totalorder %s38_s23, 0 }
  0x12   : > { %p813_p8 = por %p57_p5, %p56_p3  ;;  %p140_p10 = scmp.eq.s32.totalorder %s467_s19, 1 }
  0x13   : > { %p817_p9 = por %p134_p6, %p50_p1  ;;  %p469_p12 = scmp.ge.s32.totalorder %s738_s17, 2 }
  0x14   : > { %s822_s26 = scalar_select %p41_p7, %s726_s14, %s43_s21  }
  0x15   : > { %p824_p11 = por %p140_p10, %p56_p3  ;;  %p507_p13 = scmp.lt.s32.totalorder %s738_s17, 2 }
  0x16   : > { %940 = sst [smem:[#allocation14_spill]] %s822_s26  ;;  %s831_s28 = sand.u32 1, %s726_s14  }
  0x17   : > { %s180_s29 = sand.u32 1, %s738_s17   ;;  %s472_s30 = sshll.u32 %s831_s28, 5 }
  0x18   : > { %p837_p0 = pnand %p507_p13, %p805_p4  ;;  %s484_s5 = sshll.u32 %s734_s16, 5 }
  0x19   : > { %s943_s1 = sld [smem:[#allocation15_spill]]  ;;  %s184_s10 = scalar_lea.vmem [#allocation5], %s472_s30 }
  0x1a   : > { %s192_s11 = sshll.u32 %s184_s10, 4  ;;  %s181_s19 = scalar_lea.sflag [#allocation6], %s180_s29  ;;  %s193_s11 = int_to_ptr.vmem [resolvable:$true] %s192_s11 }
  0x1b   : > { %s740_s21 = smov 128   ;;  %s741_s22 = smov 8  }
  0x1c   : > { %p475_p1 = scmp.ge.s32.totalorder %s738_s17, 1  ;;  %p217_p2 = scmp.lt.s32.totalorder %s738_s17, 3 }
  0x1d   : > { %s471_s30 = sshll.u32 %s734_s16, 3  ;;  %s205_s26 = scalar_lea.vmem [#allocation7], %s831_s28 }
  0x1e   : > { %p849_p3 = pnand %p475_p1, %p217_p2  ;;  %s169_s29 = scalar_lea.hbm %s928_s0, %s471_s30 }
  0x1f   : > { %s189_s8 = scalar_lea.hbm %s943_s1, %s484_s5  ;;  %s470_s5 = sshll.u32 %s831_s28, 3 }
  0x20   : > { %s190_s9 = sshll.u32 %s189_s8, 4  ;;  %s171_s8 = sshll.u32 %s169_s29, 4  ;;  %s191_s9 = int_to_ptr.hbm [resolvable:$true] %s190_s9  ;;  %s172_s8 = int_to_ptr.hbm [resolvable:$true] %s171_s8 }
  0x21   : > { %499 = dma.hbm_to_vmem [thread:$0]  (!%p837_p0), %s191_s9, 512, %s193_s11, %s181_s19, %s740_s21, %s740_s21, %s741_s22  }
  0x22   : > { %s164_s10 = scalar_lea.vmem [#allocation2], %s470_s5  ;;  %s161_s9 = scalar_lea.sflag [#allocation3], %s831_s28 }
  0x23   : > { %s173_s1 = sshll.u32 %s164_s10, 4  ;;  %s208_s22 = scalar_lea.hbm %s930_s2, %s734_s16  ;;  %s174_s1 = int_to_ptr.vmem [resolvable:$true] %s173_s1 }
  0x24   : > { %496 = dma.hbm_to_vmem [thread:$0]  (!%p837_p0), %s172_s8, 128, %s174_s1, %s161_s9  }
  0x25   : > { %s210_s20 = sshll.u32 %s208_s22, 4  ;;  %s212_s14 = sshll.u32 %s205_s26, 4  ;;  %s211_s20 = int_to_ptr.hbm [resolvable:$true] %s210_s20  ;;  %s213_s14 = int_to_ptr.vmem [resolvable:$true] %s212_s14 }
  0x26   : > { %502 = dma.hbm_to_vmem [thread:$0]  (!%p837_p0), %s211_s20, 16, %s213_s14, %s181_s19  }
  0x27   : > { %221 = sbr.rel (%p849_p3) target bundleno = 195 (0xc3), region = 32  ;;  %s871_s5 = sand.u32 (!%p849_p3), 1, %s722_s13  }
  0x28   : > { %s476_s1 = sshll.u32 (!%p849_p3), %s871_s5, 3  ;;  %s224_s30 = scalar_lea.sflag (!%p849_p3), [#allocation3], %s871_s5 }
  0x29   : > { %s227_s6 = scalar_lea.vmem (!%p849_p3), [#allocation2], %s476_s1 }
  0x2c   : > { %705 = dma.done.wait (%p813_p8), %s224_s30, 128  }
  0x2d   : > { %707 = vsyncadd (%p813_p8), %s224_s30, 4294967168  ;;  %s233_s14 = sand.u32 1, %s793_s18   ;;  %s477_s20 = sshll.u32 %s871_s5, 5 }
  0x2e   : > { %s234_s26 = scalar_lea.sflag [#allocation6], %s233_s14  ;;  %s237_s28 = scalar_lea.vmem [#allocation5], %s477_s20 }
  0x2f   : > { %709 = dma.done.wait (%p813_p8), %s234_s26, 528  }
  0x30   : > { %711 = vsyncadd (%p813_p8), %s234_s26, 4294966768  ;;  %v279_v0 = vld [vmem:[%s227_s6] sm:$0xff]  ;;  %vm281_vm0 = vcmask 261120   ;;  %v297_v4 = vld [vmem:[%s237_s28 + $0x8] sm:$0xff]  ;;  %s246_s18 = scalar_lea.vmem [#allocation7], %s871_s5  ;;  %s481_s24 = sshll.u32 %s730_s15, 3 }
  0x31   : > { %v299_v1 = vld [vmem:[%s237_s28 + $0x18] sm:$0xff]  ;;  %v298_v2 = vld [vmem:[%s237_s28 + $0x10] sm:$0xff]  ;;  %v280_v3 = vmul.f32 %v279_v0, %v279_v0  ;;  %v296_v6 = vld [vmem:[%s237_s28] sm:$0xff]  ;;  %s342_s23 = scalar_lea.hbm %s931_s3, %s481_s24  ;;  %s278_s7 = scalar_lea.vmem [#allocation8], %s476_s1 }
  0x32   : > { %315 = vmatpush.msra.mxu0 %v299_v1  ;;  %v559_v16 = vld [vmem:[%s246_s18] ss:$0 sm:$0xff]  ;;  %s344_s29 = sshll.u32 %s278_s7, 4  ;;  %s346_s8 = sshll.u32 %s342_s23, 4  ;;  %s345_s29 = int_to_ptr.vmem [resolvable:$true] %s344_s29  ;;  %s347_s8 = int_to_ptr.hbm [resolvable:$true] %s346_s8 }
  0x33   : > { %v282_v5 = vsel %vm281_vm0, %v280_v3, 0.0  ;;  %s331_s15 = scalar_lea.sflag [#allocation4], %s871_s5  ;;  %s666_s10 = sshra.s32 %s347_s8, 4  ;;  %s667_s10 = int_to_ptr.hbm [resolvable:$true] %s666_s10 }
  0x34   : > { %316 = vmatpush.msra.mxu0 %v298_v2  ;;  %283 = vadd.xlane.f32.xlu0 %v282_v5  ;;  %s668_s9 = scalar_lea.hbm %s667_s10, 8  ;;  %s672_s22 = scalar_lea.hbm %s931_s3, 16 }
  0x35   : > { %p669_p4 = scmp.ne.s32.totalorder %s667_s10, %s668_s9  ;;  %p673_p7 = scmp.lt.s32.totalorder %s667_s10, %s931_s3 }
  0x36   : > { %317 = vmatpush.msra.mxu0 %v297_v4  ;;  %p674_p8 = scmp.lt.s32.totalorder %s672_s22, %s668_s9 }
  0x37   : > { %p670_p5 = pnand %p669_p4, %p817_p9 }
  0x38   : > { %318 = vmatpush.msra.mxu0 %v296_v6  ;;  %p675_p10 = por %p674_p8, %p673_p7 }
  0x39   : > { %479 = vmatmul.msk.f32.vlgmr.msra.gmra.mxu0 %vm281_vm0, %v279_v0  ;;  %p671_p6 = pneg %p670_p5 }
  0x3b   : > { %p676_p13 = pnand %p675_p10, %p671_p6 }
  0xa7   : > { %v284_v7 = vpop.xlane.xlu0 %283 }
  0xa8   : > { %v285_v8 = vmax.f32 %v284_v7, 1e-24 }
  0xaa   : > { %560 = vrsqrt.f32 %v285_v8  ;;  %vm292_vm2 = vweird.f32 %v285_v8 }
  0xb0   : > { %v561_v9 = vpop.eup %560 }
  0xb1   : > { %v287_v10 = vmul.f32 %v561_v9, %v285_v8  ;;  %vm293_vm1 = vweird.f32 %v561_v9 }
  0xb2   : > { %vm294_vm3 = vmor %vm292_vm2, %vm293_vm1 }
  0xb3   : > { %v288_v11 = vmul.f32 %v561_v9, %v287_v10 }
  0xb5   : > { %v289_v12 = vmul.f32 0.5, %v288_v11 }
  0xb6   : > { %v320_v15 = vpop.f32.mrf.mxu0 }
  0xb7   : > { %v290_v13 = vsub.f32 1.5, %v289_v12 }
  0xb9   : > { %v291_v14 = vmul.f32 %v561_v9, %v290_v13 }
  0xbb   : > { %v295_v17 = vsel %vm294_vm3, %v561_v9, %v291_v14 }
  0xbc   : > { %v323_v18 = vmul.f32 %v320_v15, %v295_v17 }
  0xbe   : > { %v328_v19 = vadd.f32 %v559_v16, %v323_v18 }
  0xc0   : > { %329 = vst [vmem:[%s278_s7] sm:$0xff] %v328_v19 }
  0xc1   : > { %679 = shalt.err (!%p676_p13)
}
  0xc2   : > { %491 = dma.vmem_to_hbm [thread:$0]  (%p817_p9), %s345_s29, 128, %s347_s8, %s331_s15  }
  0xc3 PF: > { %s358_s5 = sand.u32 1, %s718_s12   ;;  %p504_p0 = pnand %p469_p12, %p824_p11 }
  0xc4   : > { %s359_s6 = scalar_lea.sflag [#allocation4], %s358_s5 }
  0xc5   : > { %p505_p1 = pneg %p504_p0 }
  0xc7   : > { %713 = dma.done.wait (%p505_p1), %s359_s6, 128  }
  0xc8   : > { %715 = vsyncadd (%p505_p1), %s359_s6, 4294967168  ;;  %s22_s17 = sadd.s32 1, %s738_s17   ;;  %s945_s14 = sld [smem:[#allocation12_spill]] }
  0xc9   : > { %p19_p2 = scmp.ge.s32.totalorder %s22_s17, 4   ;;  %s946_s20 = sld [smem:[#allocation14_spill]] }
  0xca   : > { %s947_s25 = sld [smem:[#allocation13_spill]]  ;;  %s948_s12 = smov %s722_s13 }
  0xcb   : > { %s951_s15 = smov %s734_s16 }
  0xcc   :  { %21 = sbr.rel (!%p19_p2) target bundleno = 10 (0xa), region = 101 }
  0xce   : > { %s949_s13 = smov %s945_s14 }
  0xcf   : > { %s950_s14 = smov %s946_s20 }
  0xd0   : > { %s952_s16 = smov %s947_s25 }
  0xd1   :  { %365 = vsyncpa [#allocation3], 1 }
  0xd2   :  { %367 = vsyncpa [#allocation3 + $0x1], 1 }
  0xd3   :  { %368 = vsyncpa [#allocation6], 1 }
  0xd4   :  { %370 = vsyncpa [#allocation6 + $0x1], 1 }
  0xd5   :  { %371 = vsyncpa [#allocation4], 1 }
  0xd6   :  { %373 = vsyncpa [#allocation4 + $0x1], 1 }

</bundles_post_ra>
